<compile_context>
chip_gen: v6e
topology: v6e:2x2x1
jax: 0.10.0
libtpu: 0.0.40
codegen_flags: <defaults>
</compile_context>

<pallas_src>
import math
import jax
import jax.numpy as jnp
from jax.experimental import pallas as pl
from jax.experimental.pallas import tpu as pltpu

# ---- static problem sizes (small, consistent with the module) -------------
B, S = 2, 8
D_MODEL, D_INNER, HEADS, DK, DV = 32, 64, 4, 8, 8
BS = B * S
LN_EPS = 1e-6

# fused QKV column offsets inside the (BS, 3*H*DK) projection result
_QO = 0
_KO = HEADS * DK
_VO = 2 * HEADS * DK

# packed slab: rows [0:32)=w_qkv(96 cols, Q pre-scaled) [32:64)=wo(32) [64:96)=w1(64)
#              [96:160)=w2(32) [160:168)=bias/LN vectors [168:184)=additive mask(16x16)
PACK_W = 128
_W_PACK_SHAPE = (184, PACK_W)

# lane-dense output slab layout
OUT_W = 128
_ATTN_OFF = D_MODEL                      # 32
_PAD_OFF = D_MODEL + HEADS * BS          # 96


def encoder_layer_kernel(x_ref, w_ref, out_ref, ctx_ref):
    x = x_ref[...]                                    # (BS, D_MODEL) = (16, 32)

    # --- unpack the single weight slab (sublane slices at lane offset 0 -> cheap) ---
    w_qkv = w_ref[0:32, 0:96]                         # (D_MODEL, 3*H*DK), Q cols pre-scaled
    wo    = w_ref[32:64, 0:32]                        # (H*DV, D_MODEL)
    w1    = w_ref[64:96, 0:64]                        # (D_MODEL, D_INNER)
    w2    = w_ref[96:160, 0:32]                       # (D_INNER, D_MODEL)

    b_qkv = w_ref[160:161, 0:96]                      # Q bias pre-scaled
    bf1   = w_ref[161:162, 0:64]
    bo    = w_ref[162:163, 0:32]
    g1    = w_ref[163:164, 0:32]
    be1   = w_ref[164:165, 0:32]
    bf2   = w_ref[165:166, 0:32]
    g2    = w_ref[166:167, 0:32]
    be2   = w_ref[167:168, 0:32]
    mask_add = w_ref[168:184, 0:16]                   # (16, 16) additive 0 / -1e30 batch mask
    # TODO(synk): optional self_attention_mask not wired in (mask=None path only).

    # --- fused Q/K/V projection: one MXU matmul for the whole batch ---
    qkv = jnp.dot(x, w_qkv, preferred_element_type=jnp.float32) + b_qkv   # (16, 96)

    for h in range(HEADS):                            # static loop, HEADS = 4
        qh = qkv[:, _QO + h * DK:_QO + (h + 1) * DK]                      # (16, 8)
        kh = qkv[:, _KO + h * DK:_KO + (h + 1) * DK]                      # (16, 8)
        vh = qkv[:, _VO + h * DV:_VO + (h + 1) * DV]                      # (16, 8)

        # scores = qh @ kh^T (scale already folded into Wq/bq) + block-diag batch mask
        s = jax.lax.dot_general(qh, kh, (((1,), (1,)), ((), ())),
                                preferred_element_type=jnp.float32) + mask_add  # (16,16)

        # numerically-stable softmax along the key axis (exact division for parity)
        s = s - jnp.max(s, axis=-1, keepdims=True)
        e = jnp.exp(s)
        p = e / jnp.sum(e, axis=-1, keepdims=True)                        # (16, 16)

        # store this head's probs straight into the lane-dense output slab
        out_ref[:, _ATTN_OFF + h * BS:_ATTN_OFF + (h + 1) * BS] = p

        # stage this head's context at lane offset h*DV (masked probs are exactly 0)
        ctx_ref[:, h * DV:(h + 1) * DV] = jnp.dot(
            p, vh, preferred_element_type=jnp.float32)                    # (16, 8)

    # --- single fused output projection + Wo bias + residual ---
    acc = x + bo + jnp.dot(ctx_ref[...], wo, preferred_element_type=jnp.float32)  # (16,32)

    # --- residual + LayerNorm 1 (post-LN), dropout = identity (eval) ---
    mu1 = jnp.mean(acc, axis=-1, keepdims=True)
    var1 = jnp.mean((acc - mu1) ** 2, axis=-1, keepdims=True)
    ln1 = (acc - mu1) * jax.lax.rsqrt(var1 + LN_EPS) * g1 + be1

    # --- position-wise feed-forward: W2(relu(W1 x)) + residual + LayerNorm 2 ---
    hid = jnp.maximum(
        jnp.dot(ln1, w1, preferred_element_type=jnp.float32) + bf1, 0.0)  # (16, 64)
    ff = jnp.dot(hid, w2, preferred_element_type=jnp.float32) + bf2       # (16, 32)
    res2 = ff + ln1
    mu2 = jnp.mean(res2, axis=-1, keepdims=True)
    var2 = jnp.mean((res2 - mu2) ** 2, axis=-1, keepdims=True)
    ln2 = (res2 - mu2) * jax.lax.rsqrt(var2 + LN_EPS) * g2 + be2

    out_ref[:, 0:D_MODEL] = ln2                                           # lanes [0:32)
    out_ref[:, _PAD_OFF:OUT_W] = jnp.zeros((BS, OUT_W - _PAD_OFF), jnp.float32)


def _pad_to(a, rows, cols):
    return jnp.pad(a, ((0, rows - a.shape[0]), (0, cols - a.shape[1])))


def pack_params(params):
    """One-time packing of all parameters into a single (184, 128) f32 slab."""
    (wq, bq, wk, bk, wv, bv, wo, bo,
     g1, be1, w1, bf1, w2, bf2, g2, be2) = params

    scale = 1.0 / math.sqrt(DK)
    # fold the 1/sqrt(dk) attention scale into the Q projection (weights + bias)
    w_qkv = jnp.concatenate([wq * scale, wk, wv], axis=1)                 # (32, 96)
    b_qkv = jnp.concatenate([bq * scale, bk, bv], axis=1)                 # (1, 96)

    # additive block-diagonal batch mask: token i only attends within its batch item
    row_b = jnp.arange(BS)[:, None] // S
    col_b = jnp.arange(BS)[None, :] // S
    mask_add = jnp.where(row_b == col_b, 0.0, -1e30).astype(jnp.float32)  # (16, 16)

    w_pack = jnp.concatenate([
        _pad_to(w_qkv, 32, PACK_W),
        _pad_to(wo, 32, PACK_W),
        _pad_to(w1, 32, PACK_W),
        _pad_to(w2, 64, PACK_W),
        _pad_to(b_qkv, 1, PACK_W),
        _pad_to(bf1, 1, PACK_W),
        _pad_to(bo, 1, PACK_W),
        _pad_to(g1, 1, PACK_W),
        _pad_to(be1, 1, PACK_W),
        _pad_to(bf2, 1, PACK_W),
        _pad_to(g2, 1, PACK_W),
        _pad_to(be2, 1, PACK_W),
        _pad_to(mask_add, 16, PACK_W),
    ], axis=0)                                                            # (184, 128)
    assert w_pack.shape == _W_PACK_SHAPE
    return w_pack


@jax.jit
def encoder_layer(x, w_pack):
    """x: (B, S, D_MODEL) f32, w_pack: pre-packed (184, 128) slab.
    Returns (encoder_output (B,S,D), attention (B,H,S,S))."""
    x2d = x.reshape(BS, D_MODEL)                                          # free reshape

    out_slab = pl.pallas_call(
        encoder_layer_kernel,
        out_shape=jax.ShapeDtypeStruct((BS, OUT_W), jnp.float32),
        in_specs=[
            pl.BlockSpec(memory_space=pltpu.MemorySpace.VMEM),
            pl.BlockSpec(memory_space=pltpu.MemorySpace.VMEM),
        ],
        out_specs=pl.BlockSpec(memory_space=pltpu.MemorySpace.VMEM),
        scratch_shapes=[pltpu.VMEM((BS, HEADS * DV), jnp.float32)],       # staged head ctx
    )(x2d, w_pack)

    enc_out = out_slab[:, :D_MODEL].reshape(B, S, D_MODEL)

    # lanes [32:96): per head, the full (BS, BS) prob matrix; take the diagonal batch blocks
    pf = out_slab[:, _ATTN_OFF:_PAD_OFF].reshape(B, S, HEADS, B, S)
    bidx = jnp.arange(B)
    attn = pf[bidx, :, :, bidx, :]                                        # (B, S, H, S)
    attn = jnp.transpose(attn, (0, 2, 1, 3))                              # (B, H, S, S)
    return enc_out, attn


def make_params(key):
    ks = jax.random.split(key, 10)

    def lin(k, fan_in, fan_out):
        return jax.random.normal(k, (fan_in, fan_out), jnp.float32) / jnp.sqrt(float(fan_in))

    wq = lin(ks[0], D_MODEL, HEADS * DK)
    wk = lin(ks[1], D_MODEL, HEADS * DK)
    wv = lin(ks[2], D_MODEL, HEADS * DV)
    wo = lin(ks[3], HEADS * DV, D_MODEL)
    w1 = lin(ks[4], D_MODEL, D_INNER)
    w2 = lin(ks[5], D_INNER, D_MODEL)

    bq = 0.01 * jax.random.normal(ks[6], (1, HEADS * DK), jnp.float32)
    bk = 0.01 * jax.random.normal(ks[7], (1, HEADS * DK), jnp.float32)
    bv = 0.01 * jax.random.normal(ks[8], (1, HEADS * DV), jnp.float32)
    bo = jnp.zeros((1, D_MODEL), jnp.float32)
    bf1 = jnp.zeros((1, D_INNER), jnp.float32)
    bf2 = jnp.zeros((1, D_MODEL), jnp.float32)

    g1 = jnp.ones((1, D_MODEL), jnp.float32)
    be1 = jnp.zeros((1, D_MODEL), jnp.float32)
    g2 = jnp.ones((1, D_MODEL), jnp.float32)
    be2 = jnp.zeros((1, D_MODEL), jnp.float32)

    return (wq, bq, wk, bk, wv, bv, wo, bo,
            g1, be1, w1, bf1, w2, bf2, g2, be2)


if __name__ == "__main__":
    key = jax.random.PRNGKey(0)
    kx, kp = jax.random.split(key)
    x = jax.random.normal(kx, (B, S, D_MODEL), jnp.float32)
    params = make_params(kp)

    # one-time packing at init (hoisted out of the per-call path)
    w_pack = jax.block_until_ready(pack_params(params))

    enc_out, enc_attn = encoder_layer(x, w_pack)
    jax.block_until_ready((enc_out, enc_attn))

    assert enc_out.shape == (B, S, D_MODEL)
    assert enc_attn.shape == (B, HEADS, S, S)
    print("KERNEL_OK")
</pallas_src>

<mosaic_0001>
module attributes {stable_mosaic.version = 11 : i64} {
  func.func @encoder_layer_kernel(%arg0: memref<16x32xf32, #tpu.memory_space<vmem>>, %arg1: memref<184x128xf32, #tpu.memory_space<vmem>>, %arg2: memref<16x128xf32, #tpu.memory_space<vmem>>, %arg3: memref<16x32xf32, #tpu.memory_space<vmem>>) attributes {dimension_semantics = [], scalar_prefetch = 0 : i64, scratch_operands = 1 : i64, tpu.core_type = #tpu.core_type<tc>} {
    %c0 = arith.constant 0 : index
    %c0_0 = arith.constant 0 : index
    %0 = vector.load %arg0[%c0, %c0_0] : memref<16x32xf32, #tpu.memory_space<vmem>>, vector<16x32xf32>
    %c0_1 = arith.constant 0 : index
    %c0_2 = arith.constant 0 : index
    %1 = vector.load %arg1[%c0_1, %c0_2] : memref<184x128xf32, #tpu.memory_space<vmem>>, vector<32x96xf32>
    %c32 = arith.constant 32 : index
    %c0_3 = arith.constant 0 : index
    %2 = vector.load %arg1[%c32, %c0_3] : memref<184x128xf32, #tpu.memory_space<vmem>>, vector<32x32xf32>
    %c64 = arith.constant 64 : index
    %c0_4 = arith.constant 0 : index
    %3 = vector.load %arg1[%c64, %c0_4] : memref<184x128xf32, #tpu.memory_space<vmem>>, vector<32x64xf32>
    %c96 = arith.constant 96 : index
    %c0_5 = arith.constant 0 : index
    %4 = vector.load %arg1[%c96, %c0_5] : memref<184x128xf32, #tpu.memory_space<vmem>>, vector<64x32xf32>
    %c160 = arith.constant 160 : index
    %c0_6 = arith.constant 0 : index
    %5 = vector.load %arg1[%c160, %c0_6] : memref<184x128xf32, #tpu.memory_space<vmem>>, vector<1x96xf32>
    %c161 = arith.constant 161 : index
    %c0_7 = arith.constant 0 : index
    %6 = vector.load %arg1[%c161, %c0_7] : memref<184x128xf32, #tpu.memory_space<vmem>>, vector<1x64xf32>
    %c162 = arith.constant 162 : index
    %c0_8 = arith.constant 0 : index
    %7 = vector.load %arg1[%c162, %c0_8] : memref<184x128xf32, #tpu.memory_space<vmem>>, vector<1x32xf32>
    %c163 = arith.constant 163 : index
    %c0_9 = arith.constant 0 : index
    %8 = vector.load %arg1[%c163, %c0_9] : memref<184x128xf32, #tpu.memory_space<vmem>>, vector<1x32xf32>
    %c164 = arith.constant 164 : index
    %c0_10 = arith.constant 0 : index
    %9 = vector.load %arg1[%c164, %c0_10] : memref<184x128xf32, #tpu.memory_space<vmem>>, vector<1x32xf32>
    %c165 = arith.constant 165 : index
    %c0_11 = arith.constant 0 : index
    %10 = vector.load %arg1[%c165, %c0_11] : memref<184x128xf32, #tpu.memory_space<vmem>>, vector<1x32xf32>
    %c166 = arith.constant 166 : index
    %c0_12 = arith.constant 0 : index
    %11 = vector.load %arg1[%c166, %c0_12] : memref<184x128xf32, #tpu.memory_space<vmem>>, vector<1x32xf32>
    %c167 = arith.constant 167 : index
    %c0_13 = arith.constant 0 : index
    %12 = vector.load %arg1[%c167, %c0_13] : memref<184x128xf32, #tpu.memory_space<vmem>>, vector<1x32xf32>
    %c168 = arith.constant 168 : index
    %c0_14 = arith.constant 0 : index
    %13 = vector.load %arg1[%c168, %c0_14] : memref<184x128xf32, #tpu.memory_space<vmem>>, vector<16x16xf32>
    %cst = arith.constant dense<0.000000e+00> : vector<16x96xf32>
    %14 = tpu.matmul %0, %1, %cst {dimension_numbers = #tpu.dot_dimension_numbers<[1], [0], [0], [1], [0, 0, 1, 1], [], []>} : vector<16x32xf32>, vector<32x96xf32>, vector<16x96xf32> -> vector<16x96xf32>
    %15 = vector.broadcast %5 : vector<1x96xf32> to vector<16x96xf32>
    %16 = arith.addf %14, %15 : vector<16x96xf32>
    %17 = vector.extract_strided_slice %16 {offsets = [0, 0], sizes = [16, 8], strides = [1, 1]} : vector<16x96xf32> to vector<16x8xf32>
    %18 = vector.extract_strided_slice %16 {offsets = [0, 32], sizes = [16, 8], strides = [1, 1]} : vector<16x96xf32> to vector<16x8xf32>
    %19 = vector.extract_strided_slice %16 {offsets = [0, 64], sizes = [16, 8], strides = [1, 1]} : vector<16x96xf32> to vector<16x8xf32>
    %cst_15 = arith.constant dense<0.000000e+00> : vector<16x16xf32>
    %20 = tpu.matmul %17, %18, %cst_15 {dimension_numbers = #tpu.dot_dimension_numbers<[1], [1], [0], [0], [0, 0, 1, 0], [], []>} : vector<16x8xf32>, vector<16x8xf32>, vector<16x16xf32> -> vector<16x16xf32>
    %21 = arith.addf %20, %13 : vector<16x16xf32>
    %cst_16 = arith.constant dense<0xFF800000> : vector<16xf32>
    %22 = vector.multi_reduction <maximumf>, %21, %cst_16 [1] : vector<16x16xf32> to vector<16xf32>
    %23 = vector.shape_cast %22 : vector<16xf32> to vector<16x1xf32>
    %24 = vector.broadcast %23 : vector<16x1xf32> to vector<16x16xf32>
    %25 = arith.subf %21, %24 : vector<16x16xf32>
    %26 = math.exp %25 : vector<16x16xf32>
    %cst_17 = arith.constant dense<0.000000e+00> : vector<16xf32>
    %27 = vector.multi_reduction <add>, %26, %cst_17 [1] : vector<16x16xf32> to vector<16xf32>
    %28 = vector.shape_cast %27 : vector<16xf32> to vector<16x1xf32>
    %29 = vector.broadcast %28 : vector<16x1xf32> to vector<16x16xf32>
    %30 = arith.divf %26, %29 : vector<16x16xf32>
    %c0_18 = arith.constant 0 : index
    %c32_19 = arith.constant 32 : index
    %31 = vector.load %arg2[%c0_18, %c32_19] : memref<16x128xf32, #tpu.memory_space<vmem>>, vector<16x16xf32>
    tpu.vector_store %arg2[%c0_18, %c32_19], %30 {strides = array<i32>} : memref<16x128xf32, #tpu.memory_space<vmem>>, vector<16x16xf32>,
    %cst_20 = arith.constant dense<0.000000e+00> : vector<16x8xf32>
    %32 = tpu.matmul %30, %19, %cst_20 {dimension_numbers = #tpu.dot_dimension_numbers<[1], [0], [0], [1], [0, 0, 1, 1], [], []>} : vector<16x16xf32>, vector<16x8xf32>, vector<16x8xf32> -> vector<16x8xf32>
    %c0_21 = arith.constant 0 : index
    %c0_22 = arith.constant 0 : index
    %33 = vector.load %arg3[%c0_21, %c0_22] : memref<16x32xf32, #tpu.memory_space<vmem>>, vector<16x8xf32>
    tpu.vector_store %arg3[%c0_21, %c0_22], %32 {strides = array<i32>} : memref<16x32xf32, #tpu.memory_space<vmem>>, vector<16x8xf32>,
    %34 = vector.extract_strided_slice %16 {offsets = [0, 8], sizes = [16, 8], strides = [1, 1]} : vector<16x96xf32> to vector<16x8xf32>
    %35 = vector.extract_strided_slice %16 {offsets = [0, 40], sizes = [16, 8], strides = [1, 1]} : vector<16x96xf32> to vector<16x8xf32>
    %36 = vector.extract_strided_slice %16 {offsets = [0, 72], sizes = [16, 8], strides = [1, 1]} : vector<16x96xf32> to vector<16x8xf32>
    %cst_23 = arith.constant dense<0.000000e+00> : vector<16x16xf32>
    %37 = tpu.matmul %34, %35, %cst_23 {dimension_numbers = #tpu.dot_dimension_numbers<[1], [1], [0], [0], [0, 0, 1, 0], [], []>} : vector<16x8xf32>, vector<16x8xf32>, vector<16x16xf32> -> vector<16x16xf32>
    %38 = arith.addf %37, %13 : vector<16x16xf32>
    %cst_24 = arith.constant dense<0xFF800000> : vector<16xf32>
    %39 = vector.multi_reduction <maximumf>, %38, %cst_24 [1] : vector<16x16xf32> to vector<16xf32>
    %40 = vector.shape_cast %39 : vector<16xf32> to vector<16x1xf32>
    %41 = vector.broadcast %40 : vector<16x1xf32> to vector<16x16xf32>
    %42 = arith.subf %38, %41 : vector<16x16xf32>
    %43 = math.exp %42 : vector<16x16xf32>
    %cst_25 = arith.constant dense<0.000000e+00> : vector<16xf32>
    %44 = vector.multi_reduction <add>, %43, %cst_25 [1] : vector<16x16xf32> to vector<16xf32>
    %45 = vector.shape_cast %44 : vector<16xf32> to vector<16x1xf32>
    %46 = vector.broadcast %45 : vector<16x1xf32> to vector<16x16xf32>
    %47 = arith.divf %43, %46 : vector<16x16xf32>
    %c0_26 = arith.constant 0 : index
    %c48 = arith.constant 48 : index
    %48 = vector.load %arg2[%c0_26, %c48] : memref<16x128xf32, #tpu.memory_space<vmem>>, vector<16x16xf32>
    tpu.vector_store %arg2[%c0_26, %c48], %47 {strides = array<i32>} : memref<16x128xf32, #tpu.memory_space<vmem>>, vector<16x16xf32>,
    %cst_27 = arith.constant dense<0.000000e+00> : vector<16x8xf32>
    %49 = tpu.matmul %47, %36, %cst_27 {dimension_numbers = #tpu.dot_dimension_numbers<[1], [0], [0], [1], [0, 0, 1, 1], [], []>} : vector<16x16xf32>, vector<16x8xf32>, vector<16x8xf32> -> vector<16x8xf32>
    %c0_28 = arith.constant 0 : index
    %c8 = arith.constant 8 : index
    %50 = vector.load %arg3[%c0_28, %c8] : memref<16x32xf32, #tpu.memory_space<vmem>>, vector<16x8xf32>
    tpu.vector_store %arg3[%c0_28, %c8], %49 {strides = array<i32>} : memref<16x32xf32, #tpu.memory_space<vmem>>, vector<16x8xf32>,
    %51 = vector.extract_strided_slice %16 {offsets = [0, 16], sizes = [16, 8], strides = [1, 1]} : vector<16x96xf32> to vector<16x8xf32>
    %52 = vector.extract_strided_slice %16 {offsets = [0, 48], sizes = [16, 8], strides = [1, 1]} : vector<16x96xf32> to vector<16x8xf32>
    %53 = vector.extract_strided_slice %16 {offsets = [0, 80], sizes = [16, 8], strides = [1, 1]} : vector<16x96xf32> to vector<16x8xf32>
    %cst_29 = arith.constant dense<0.000000e+00> : vector<16x16xf32>
    %54 = tpu.matmul %51, %52, %cst_29 {dimension_numbers = #tpu.dot_dimension_numbers<[1], [1], [0], [0], [0, 0, 1, 0], [], []>} : vector<16x8xf32>, vector<16x8xf32>, vector<16x16xf32> -> vector<16x16xf32>
    %55 = arith.addf %54, %13 : vector<16x16xf32>
    %cst_30 = arith.constant dense<0xFF800000> : vector<16xf32>
    %56 = vector.multi_reduction <maximumf>, %55, %cst_30 [1] : vector<16x16xf32> to vector<16xf32>
    %57 = vector.shape_cast %56 : vector<16xf32> to vector<16x1xf32>
    %58 = vector.broadcast %57 : vector<16x1xf32> to vector<16x16xf32>
    %59 = arith.subf %55, %58 : vector<16x16xf32>
    %60 = math.exp %59 : vector<16x16xf32>
    %cst_31 = arith.constant dense<0.000000e+00> : vector<16xf32>
    %61 = vector.multi_reduction <add>, %60, %cst_31 [1] : vector<16x16xf32> to vector<16xf32>
    %62 = vector.shape_cast %61 : vector<16xf32> to vector<16x1xf32>
    %63 = vector.broadcast %62 : vector<16x1xf32> to vector<16x16xf32>
    %64 = arith.divf %60, %63 : vector<16x16xf32>
    %c0_32 = arith.constant 0 : index
    %c64_33 = arith.constant 64 : index
    %65 = vector.load %arg2[%c0_32, %c64_33] : memref<16x128xf32, #tpu.memory_space<vmem>>, vector<16x16xf32>
    tpu.vector_store %arg2[%c0_32, %c64_33], %64 {strides = array<i32>} : memref<16x128xf32, #tpu.memory_space<vmem>>, vector<16x16xf32>,
    %cst_34 = arith.constant dense<0.000000e+00> : vector<16x8xf32>
    %66 = tpu.matmul %64, %53, %cst_34 {dimension_numbers = #tpu.dot_dimension_numbers<[1], [0], [0], [1], [0, 0, 1, 1], [], []>} : vector<16x16xf32>, vector<16x8xf32>, vector<16x8xf32> -> vector<16x8xf32>
    %c0_35 = arith.constant 0 : index
    %c16 = arith.constant 16 : index
    %67 = vector.load %arg3[%c0_35, %c16] : memref<16x32xf32, #tpu.memory_space<vmem>>, vector<16x8xf32>
    tpu.vector_store %arg3[%c0_35, %c16], %66 {strides = array<i32>} : memref<16x32xf32, #tpu.memory_space<vmem>>, vector<16x8xf32>,
    %68 = vector.extract_strided_slice %16 {offsets = [0, 24], sizes = [16, 8], strides = [1, 1]} : vector<16x96xf32> to vector<16x8xf32>
    %69 = vector.extract_strided_slice %16 {offsets = [0, 56], sizes = [16, 8], strides = [1, 1]} : vector<16x96xf32> to vector<16x8xf32>
    %70 = vector.extract_strided_slice %16 {offsets = [0, 88], sizes = [16, 8], strides = [1, 1]} : vector<16x96xf32> to vector<16x8xf32>
    %cst_36 = arith.constant dense<0.000000e+00> : vector<16x16xf32>
    %71 = tpu.matmul %68, %69, %cst_36 {dimension_numbers = #tpu.dot_dimension_numbers<[1], [1], [0], [0], [0, 0, 1, 0], [], []>} : vector<16x8xf32>, vector<16x8xf32>, vector<16x16xf32> -> vector<16x16xf32>
    %72 = arith.addf %71, %13 : vector<16x16xf32>
    %cst_37 = arith.constant dense<0xFF800000> : vector<16xf32>
    %73 = vector.multi_reduction <maximumf>, %72, %cst_37 [1] : vector<16x16xf32> to vector<16xf32>
    %74 = vector.shape_cast %73 : vector<16xf32> to vector<16x1xf32>
    %75 = vector.broadcast %74 : vector<16x1xf32> to vector<16x16xf32>
    %76 = arith.subf %72, %75 : vector<16x16xf32>
    %77 = math.exp %76 : vector<16x16xf32>
    %cst_38 = arith.constant dense<0.000000e+00> : vector<16xf32>
    %78 = vector.multi_reduction <add>, %77, %cst_38 [1] : vector<16x16xf32> to vector<16xf32>
    %79 = vector.shape_cast %78 : vector<16xf32> to vector<16x1xf32>
    %80 = vector.broadcast %79 : vector<16x1xf32> to vector<16x16xf32>
    %81 = arith.divf %77, %80 : vector<16x16xf32>
    %c0_39 = arith.constant 0 : index
    %c80 = arith.constant 80 : index
    %82 = vector.load %arg2[%c0_39, %c80] : memref<16x128xf32, #tpu.memory_space<vmem>>, vector<16x16xf32>
    tpu.vector_store %arg2[%c0_39, %c80], %81 {strides = array<i32>} : memref<16x128xf32, #tpu.memory_space<vmem>>, vector<16x16xf32>,
    %cst_40 = arith.constant dense<0.000000e+00> : vector<16x8xf32>
    %83 = tpu.matmul %81, %70, %cst_40 {dimension_numbers = #tpu.dot_dimension_numbers<[1], [0], [0], [1], [0, 0, 1, 1], [], []>} : vector<16x16xf32>, vector<16x8xf32>, vector<16x8xf32> -> vector<16x8xf32>
    %c0_41 = arith.constant 0 : index
    %c24 = arith.constant 24 : index
    %84 = vector.load %arg3[%c0_41, %c24] : memref<16x32xf32, #tpu.memory_space<vmem>>, vector<16x8xf32>
    tpu.vector_store %arg3[%c0_41, %c24], %83 {strides = array<i32>} : memref<16x32xf32, #tpu.memory_space<vmem>>, vector<16x8xf32>,
    %85 = vector.broadcast %7 : vector<1x32xf32> to vector<16x32xf32>
    %86 = arith.addf %0, %85 : vector<16x32xf32>
    %c0_42 = arith.constant 0 : index
    %c0_43 = arith.constant 0 : index
    %87 = vector.load %arg3[%c0_42, %c0_43] : memref<16x32xf32, #tpu.memory_space<vmem>>, vector<16x32xf32>
    %cst_44 = arith.constant dense<0.000000e+00> : vector<16x32xf32>
    %88 = tpu.matmul %87, %2, %cst_44 {dimension_numbers = #tpu.dot_dimension_numbers<[1], [0], [0], [1], [0, 0, 1, 1], [], []>} : vector<16x32xf32>, vector<32x32xf32>, vector<16x32xf32> -> vector<16x32xf32>
    %89 = arith.addf %86, %88 : vector<16x32xf32>
    %cst_45 = arith.constant dense<0.000000e+00> : vector<16xf32>
    %90 = vector.multi_reduction <add>, %89, %cst_45 [1] : vector<16x32xf32> to vector<16xf32>
    %91 = vector.shape_cast %90 : vector<16xf32> to vector<16x1xf32>
    %cst_46 = arith.constant 3.200000e+01 : f32
    %92 = vector.broadcast %cst_46 : f32 to vector<16x1xf32>
    %93 = arith.divf %91, %92 : vector<16x1xf32>
    %94 = vector.broadcast %93 : vector<16x1xf32> to vector<16x32xf32>
    %95 = arith.subf %89, %94 : vector<16x32xf32>
    %96 = arith.mulf %95, %95 : vector<16x32xf32>
    %cst_47 = arith.constant dense<0.000000e+00> : vector<16xf32>
    %97 = vector.multi_reduction <add>, %96, %cst_47 [1] : vector<16x32xf32> to vector<16xf32>
    %98 = vector.shape_cast %97 : vector<16xf32> to vector<16x1xf32>
    %cst_48 = arith.constant 3.200000e+01 : f32
    %99 = vector.broadcast %cst_48 : f32 to vector<16x1xf32>
    %100 = arith.divf %98, %99 : vector<16x1xf32>
    %101 = vector.broadcast %93 : vector<16x1xf32> to vector<16x32xf32>
    %102 = arith.subf %89, %101 : vector<16x32xf32>
    %cst_49 = arith.constant 9.99999997E-7 : f32
    %103 = vector.broadcast %cst_49 : f32 to vector<16x1xf32>
    %104 = arith.addf %100, %103 : vector<16x1xf32>
    %105 = math.rsqrt %104 : vector<16x1xf32>
    %106 = vector.broadcast %105 : vector<16x1xf32> to vector<16x32xf32>
    %107 = arith.mulf %102, %106 : vector<16x32xf32>
    %108 = vector.broadcast %8 : vector<1x32xf32> to vector<16x32xf32>
    %109 = arith.mulf %107, %108 : vector<16x32xf32>
    %110 = vector.broadcast %9 : vector<1x32xf32> to vector<16x32xf32>
    %111 = arith.addf %109, %110 : vector<16x32xf32>
    %cst_50 = arith.constant dense<0.000000e+00> : vector<16x64xf32>
    %112 = tpu.matmul %111, %3, %cst_50 {dimension_numbers = #tpu.dot_dimension_numbers<[1], [0], [0], [1], [0, 0, 1, 1], [], []>} : vector<16x32xf32>, vector<32x64xf32>, vector<16x64xf32> -> vector<16x64xf32>
    %113 = vector.broadcast %6 : vector<1x64xf32> to vector<16x64xf32>
    %114 = arith.addf %112, %113 : vector<16x64xf32>
    %cst_51 = arith.constant 0.000000e+00 : f32
    %115 = vector.broadcast %cst_51 : f32 to vector<16x64xf32>
    %116 = arith.maximumf %114, %115 : vector<16x64xf32>
    %cst_52 = arith.constant dense<0.000000e+00> : vector<16x32xf32>
    %117 = tpu.matmul %116, %4, %cst_52 {dimension_numbers = #tpu.dot_dimension_numbers<[1], [0], [0], [1], [0, 0, 1, 1], [], []>} : vector<16x64xf32>, vector<64x32xf32>, vector<16x32xf32> -> vector<16x32xf32>
    %118 = vector.broadcast %10 : vector<1x32xf32> to vector<16x32xf32>
    %119 = arith.addf %117, %118 : vector<16x32xf32>
    %120 = arith.addf %119, %111 : vector<16x32xf32>
    %cst_53 = arith.constant dense<0.000000e+00> : vector<16xf32>
    %121 = vector.multi_reduction <add>, %120, %cst_53 [1] : vector<16x32xf32> to vector<16xf32>
    %122 = vector.shape_cast %121 : vector<16xf32> to vector<16x1xf32>
    %cst_54 = arith.constant 3.200000e+01 : f32
    %123 = vector.broadcast %cst_54 : f32 to vector<16x1xf32>
    %124 = arith.divf %122, %123 : vector<16x1xf32>
    %125 = vector.broadcast %124 : vector<16x1xf32> to vector<16x32xf32>
    %126 = arith.subf %120, %125 : vector<16x32xf32>
    %127 = arith.mulf %126, %126 : vector<16x32xf32>
    %cst_55 = arith.constant dense<0.000000e+00> : vector<16xf32>
    %128 = vector.multi_reduction <add>, %127, %cst_55 [1] : vector<16x32xf32> to vector<16xf32>
    %129 = vector.shape_cast %128 : vector<16xf32> to vector<16x1xf32>
    %cst_56 = arith.constant 3.200000e+01 : f32
    %130 = vector.broadcast %cst_56 : f32 to vector<16x1xf32>
    %131 = arith.divf %129, %130 : vector<16x1xf32>
    %132 = vector.broadcast %124 : vector<16x1xf32> to vector<16x32xf32>
    %133 = arith.subf %120, %132 : vector<16x32xf32>
    %cst_57 = arith.constant 9.99999997E-7 : f32
    %134 = vector.broadcast %cst_57 : f32 to vector<16x1xf32>
    %135 = arith.addf %131, %134 : vector<16x1xf32>
    %136 = math.rsqrt %135 : vector<16x1xf32>
    %137 = vector.broadcast %136 : vector<16x1xf32> to vector<16x32xf32>
    %138 = arith.mulf %133, %137 : vector<16x32xf32>
    %139 = vector.broadcast %11 : vector<1x32xf32> to vector<16x32xf32>
    %140 = arith.mulf %138, %139 : vector<16x32xf32>
    %141 = vector.broadcast %12 : vector<1x32xf32> to vector<16x32xf32>
    %142 = arith.addf %140, %141 : vector<16x32xf32>
    %c0_58 = arith.constant 0 : index
    %c0_59 = arith.constant 0 : index
    %143 = vector.load %arg2[%c0_58, %c0_59] : memref<16x128xf32, #tpu.memory_space<vmem>>, vector<16x32xf32>
    tpu.vector_store %arg2[%c0_58, %c0_59], %142 {strides = array<i32>} : memref<16x128xf32, #tpu.memory_space<vmem>>, vector<16x32xf32>,
    %cst_60 = arith.constant 0.000000e+00 : f32
    %144 = vector.broadcast %cst_60 : f32 to vector<16x32xf32>
    %c0_61 = arith.constant 0 : index
    %c96_62 = arith.constant 96 : index
    %145 = vector.load %arg2[%c0_61, %c96_62] : memref<16x128xf32, #tpu.memory_space<vmem>>, vector<16x32xf32>
    tpu.vector_store %arg2[%c0_61, %c96_62], %144 {strides = array<i32>} : memref<16x128xf32, #tpu.memory_space<vmem>>, vector<16x32xf32>,
    return
  }
}

</mosaic_0001>

<bundles_post_ra>
// kernel: encoder_layer.1
= control target key start
LH: loop header
LB: loop body
LE: loop exit
PB: predicated region body
PF: predicated region fallthrough
CT: control target
= control target key end

     0   :  { %7 = vsyncpa [#allocation4], 0  ;;  %s1941_s0 = inlined_call_operand.hbm [shape: f32[16,32], index: 0, kind: input, shape index: {}]   ;;  %s1942_s1 = inlined_call_operand.hbm [shape: f32[184,128], index: 1, kind: input, shape index: {}]   ;;  %s1943_s2 = inlined_call_operand.vmem [shape: f32[16,128], index: 2, kind: output, shape index: {}]  }
   0x1   :  { %8 = vsyncpa [#allocation6], 0  ;;  %s1693_s9 = smov [#allocation3]  }
   0x2   :  { %s14_s10 = sshll.u32 %s1693_s9, 4  ;;  %s15_s10 = int_to_ptr.vmem [resolvable:$true] %s14_s10 }
   0x3   :  { %s1657_s11 = scalar_lea.vmem %s15_s10, 256  ;;  %p1662_p1 = scmp.lt.s32.totalorder %s15_s10, %s15_s10 }
   0x4   :  { %p1658_p0 = scmp.ne.s32.totalorder %s15_s10, %s1657_s11  ;;  %p1663_p2 = scmp.lt.s32.totalorder %s1657_s11, %s1657_s11 }
   0x6   :  { %p1664_p3 = por %p1663_p2, %p1662_p1 }
   0x8   :  { %p1665_p4 = pnand %p1664_p3, %p1658_p0 }
   0xa   :  { %1668 = shalt.err (!%p1665_p4)
}
   0xb   :  { %s1694_s12 = smov 128   ;;  %s1695_s13 = smov 8  }
   0xc   :  { %20 = dma.hbm_to_vmem [thread:$0]  %s1941_s0, 256, %s15_s10, [#allocation4], %s1694_s12, %s1694_s12, %s1695_s13  }
   0xd   :  { %s1696_s16 = smov [#allocation5]  }
   0xe   :  { %s26_s17 = sshll.u32 %s1696_s16, 4  ;;  %s27_s17 = int_to_ptr.vmem [resolvable:$true] %s26_s17 }
   0xf   :  { %s1677_s18 = scalar_lea.vmem %s27_s17, 2944  ;;  %p1682_p6 = scmp.lt.s32.totalorder %s27_s17, %s27_s17 }
  0x10   :  { %p1678_p5 = scmp.ne.s32.totalorder %s27_s17, %s1677_s18  ;;  %p1683_p7 = scmp.lt.s32.totalorder %s1677_s18, %s1677_s18 }
  0x12   :  { %p1684_p8 = por %p1683_p7, %p1682_p6 }
  0x14   :  { %p1685_p9 = pnand %p1684_p8, %p1678_p5 }
  0x16   :  { %1688 = shalt.err (!%p1685_p9)
}
  0x17   :  { %32 = dma.hbm_to_vmem [thread:$0]  %s1942_s1, 2944, %s27_s17, [#allocation6], %s1694_s12, %s1694_s12, %s1695_s13  }
  0x18   :  { %1689 = dma.done.wait [#allocation4], 256  }
  0x19   :  { %1690 = vsyncadd [#allocation4], 4294967040 }
  0x1a   :  { %1691 = dma.done.wait [#allocation6], 2944  }
  0x1b   :  { %1692 = vsyncadd [#allocation6], 4294964352  ;;  %vm75_vm0 = vcmask 261120   ;;  %v44_v0 = vld [vmem:[#allocation5 + $0x18] sm:$0xff]  ;;  %v43_v1 = vld [vmem:[#allocation5 + $0x10] sm:$0xff]  ;;  %vm163_vm1 = vcmask 64512  }
  0x1c   :  { %1482 = vmatprep.subr.mxu1 %v44_v0  ;;  %v1735_v2 = vld [vmem:[#allocation3] sm:$0xff]  ;;  %v42_v3 = vld [vmem:[#allocation5 + $0x8] sm:$0xff]  ;;  %v41_v4 = vld [vmem:[#allocation5] sm:$0xff]  ;;  %s1697_s0 = smov 88   ;;  %s1698_s1 = smov 96   ;;  %vm247_vm2 = vcmask 130048  }
  0x1d   :  { %1483 = vmatpush3.msra.mxu1 %v44_v0  ;;  %1490 = vmatprep.mubr.msk.f32.mxu1 %vm75_vm0, %v1735_v2  ;;  %v1739_v5 = vld [vmem:[#allocation3 + $0x8] sm:$0xff]  ;;  %v1382_v6 = vld [vmem:[#allocation5 + $0xa0] ss:$0 sm:$0xff]  ;;  %s1699_s21 = smov 120   ;;  %v1767_v17 = vld [vmem:[#allocation5 + $0xb0] sm:$0xff]  ;;  %s1700_s22 = smov 64  }
  0x1e   :  { %1484 = vmatprep.subr.mxu1 %v43_v1  ;;  %v1769_v19 = vld [vmem:[#allocation5 + $0xa8] sm:$0xff]  ;;  %s1701_s23 = smov 56   ;;  %s1702_s24 = smov 80   ;;  %vm585_vm3 = vcmask 130112   ;;  %vm805_vm4 = vcmask 195712   ;;  %vm1025_vm5 = vcmask 261312  }
  0x1f   :  { %1485 = vmatpush3.msra.mxu1 %v43_v1  ;;  %s1703_s25 = smov 112   ;;  %s1704_s26 = smov 48   ;;  %vm1249_vm6 = vcmask 523264   ;;  %vm278_vm7 = vcmask 392448   ;;  %vm489_vm8 = vcmask 523648   ;;  %vm709_vm9 = vcmask 654848  }
  0x20   :  { %1486 = vmatprep.subr.mxu1 %v42_v3  ;;  %s1705_s27 = smov 72   ;;  %s1706_s28 = smov 104   ;;  %vm929_vm10 = vcmask 786048   ;;  %vm1373_vm11 = vcmask 1048320  }
  0x21   :  { %1487 = vmatpush3.msra.mxu1 %v42_v3  ;;  %s1707_s29 = smov 40   ;;  %s1708_s30 = smov 16  }
  0x22   :  { %1488 = vmatprep.subr.mxu1 %v41_v4  ;;  %s1709_s3 = smov 24   ;;  %s1710_s4 = smov 32  }
  0x23   :  { %1489 = vmatpush3.msra.mxu1 %v41_v4 }
  0x24   :  { %1491 = vmatmul.mubr.msk.f32.vlgmr.msra.gmra.mxu1 %vm75_vm0, %v1739_v5 }
  0xe4   :  { %v1492_v7 = vpop.f32.mrf.mxu1 }
  0xe5   :  { %v1743_v8 = vadd.f32 %v1492_v7, %v1382_v6 }
  0xe6   :  { %v148_v9 = vpop.f32.mrf.mxu1 }
  0xe7   :  { %v1745_v10 = vadd.f32 %v1382_v6, %v148_v9  ;;  %374 = vrot.lane.b32.xlu1 %v1743_v8, %s1697_s0  ;;  %161 = vrot.lane.b32.xlu0 %v1743_v8, %s1698_s1 }
  0xe9   :  { %1497 = vmatprep.mubr.msk.f32.mxu1 %vm163_vm1, %v1745_v10 }
  0xeb   :  { %372 = vrot.lane.b32.xlu1 %v1745_v10, %s1697_s0  ;;  %159 = vrot.lane.b32.xlu0 %v1745_v10, %s1698_s1 }
  0xef   :  { %370 = vrot.lane.b32.xlu1 %v1743_v8, %s1699_s21  ;;  %368 = vrot.lane.b32.xlu0 %v1745_v10, %s1699_s21 }
 0x159   :  { %v162_v11 = vpop.permute.xlu0 %161  ;;  %v375_v12 = vpop.permute.xlu1 %374 }
 0x15a   :  { %1493 = vmatprep.subr.msk.mxu1 %vm163_vm1, %v162_v11 }
 0x15b   :  { %1494 = vmatpush3.xpose.msk.msra.mxu1 %vm163_vm1, %v162_v11 }
 0x15d   :  { %v160_v13 = vpop.permute.xlu0 %159  ;;  %v373_v15 = vpop.permute.xlu1 %372 }
 0x15e   :  { %1495 = vmatprep.subr.msk.mxu1 %vm163_vm1, %v160_v13 }
 0x15f   :  { %1496 = vmatpush3.xpose.msk.msra.mxu1 %vm163_vm1, %v160_v13 }
 0x160   :  { %1507 = vmatprep.subr.msk.mxu1 %vm163_vm1, %v375_v12 }
 0x161   :  { %v369_v14 = vpop.permute.xlu0 %368  ;;  %v371_v16 = vpop.permute.xlu1 %370 }
 0x162   :  { %1498 = vmatmul.mubr.msk.f32.vlgmr.msra.gmra.mxu1 %vm163_vm1, %v1743_v8 }
 0x163   :  { %1508 = vmatpush3.xpose.msk.msra.mxu1 %vm163_vm1, %v375_v12  ;;  %1511 = vmatprep.mubr.msk.f32.mxu1 %vm163_vm1, %v369_v14 }
 0x164   :  { %1509 = vmatprep.subr.msk.mxu1 %vm163_vm1, %v373_v15 }
 0x167   :  { %1510 = vmatpush3.xpose.msk.msra.mxu1 %vm163_vm1, %v373_v15 }
 0x16a   :  { %1512 = vmatmul.mubr.msk.f32.vlgmr.msra.gmra.mxu1 %vm163_vm1, %v371_v16 }
 0x222   :  { %v1499_v18 = vpop.f32.mrf.mxu1 }
 0x223   :  { %v244_v20 = vadd.f32 %v1499_v18, %v1767_v17 }
 0x224   :  { %v238_v21 = vpop.f32.mrf.mxu1 }
 0x225   :  { %v239_v22 = vadd.f32 %v238_v21, %v1769_v19  ;;  %v251_v23 = vsel %vm247_vm2, %v244_v20, -inf }
 0x226   :  { %252 = vmax.xlane.f32.xlu1 %v251_v23 }
 0x227   :  { %v248_v24 = vsel %vm247_vm2, %v239_v22, -inf }
 0x228   :  { %249 = vmax.xlane.f32.xlu0 %v248_v24 }
 0x22a   :  { %v1513_v25 = vpop.f32.mrf.mxu1 }
 0x22b   :  { %v456_v28 = vadd.f32 %v1513_v25, %v1767_v17 }
 0x22c   :  { %v450_v26 = vpop.f32.mrf.mxu1 }
 0x22d   :  { %v451_v27 = vadd.f32 %v450_v26, %v1769_v19  ;;  %v462_v30 = vsel %vm247_vm2, %v456_v28, -inf }
 0x22f   :  { %v459_v29 = vsel %vm247_vm2, %v451_v27, -inf }
 0x230   :  { %460 = vmax.xlane.f32.xlu0 %v459_v29 }
 0x234   :  { %463 = vmax.xlane.f32.xlu0 %v462_v30 }
 0x237   :  { %283 = vrot.lane.b32.xlu1 %v1743_v8, %s1700_s22 }
 0x23b   :  { %494 = vrot.lane.b32.xlu1 %v1743_v8, %s1701_s23 }
 0x23f   :  { %492 = vrot.lane.b32.xlu1 %v1745_v10, %s1701_s23 }
 0x24a   :  { %281 = vrot.lane.b32.xlu0 %v1745_v10, %s1700_s22 }
 0x2af   :  { %v253_v31 = vpop.xlane.xlu1 %252 }
 0x2b0   :  { %v255_v32 = vsub.f32 %v244_v20, %v253_v31 }
 0x2b1   :  { %v250_v33 = vpop.xlane.xlu0 %249 }
 0x2b2   :  { %v258_v34 = vmul.f32 1.442695, %v255_v32  ;;  %v254_v35 = vsub.f32 %v239_v22, %v250_v33 }
 0x2b3   :  { %v284_v36 = vpop.permute.xlu1 %283 }
 0x2b4   :  { %1609 = vpow2.f32 %v258_v34  ;;  %v256_v37 = vmul.f32 1.442695, %v254_v35  ;;  %1500 = vmatprep.subr.mxu0 %v284_v36 }
 0x2b5   :  { %1501 = vmatpush3.msra.mxu0 %v284_v36 }
 0x2b6   :  { %1611 = vpow2.f32 %v256_v37 }
 0x2b7   :  { %v495_v46 = vpop.permute.xlu1 %494 }
 0x2b9   :  { %v461_v38 = vpop.xlane.xlu0 %460 }
 0x2ba   :  { %v465_v50 = vsub.f32 %v451_v27, %v461_v38 }
 0x2bb   :  { %v493_v54 = vpop.permute.xlu1 %492 }
 0x2bc   :  { %v467_v51 = vmul.f32 1.442695, %v465_v50 }
 0x2bd   :  { %v464_v39 = vpop.xlane.xlu0 %463 }
 0x2be   :  { %v466_v40 = vsub.f32 %v456_v28, %v464_v39 }
 0x2c0   :  { %v469_v41 = vmul.f32 1.442695, %v466_v40 }
 0x2c1   :  { %v1610_v42 = vpop.eup %1609  ;;  %v282_v43 = vpop.permute.xlu0 %281 }
 0x2c2   :  { %1613 = vpow2.f32 %v469_v41  ;;  %1502 = vmatprep.subr.mxu0 %v282_v43  ;;  %v263_v44 = vsel %vm247_vm2, %v1610_v42, 0.0 }
 0x2c3   :  { %v1612_v45 = vpop.eup %1611  ;;  %264 = vadd.xlane.f32.xlu0 %v263_v44  ;;  %1503 = vmatpush3.msra.mxu0 %v282_v43  ;;  %1615 = vpow2.f32 %v467_v51 }
 0x2c4   :  { %1514 = vmatprep.subr.mxu0 %v495_v46  ;;  %v260_v47 = vsel %vm247_vm2, %v1612_v45, 0.0 }
 0x2c5   :  { %261 = vadd.xlane.f32.xlu1 %v260_v47 }
 0x2cf   :  { %v1614_v48 = vpop.eup %1613 }
 0x2d0   :  { %v474_v49 = vsel %vm247_vm2, %v1614_v48, 0.0  ;;  %v1616_v52 = vpop.eup %1615 }
 0x2d1   :  { %475 = vadd.xlane.f32.xlu0 %v474_v49  ;;  %v471_v53 = vsel %vm247_vm2, %v1616_v52, 0.0 }
 0x2d6   :  { %592 = vrot.lane.b32.xlu1 %v1745_v10, %s1702_s24 }
 0x2e7   :  { %594 = vrot.lane.b32.xlu0 %v1743_v8, %s1702_s24 }
 0x2eb   :  { %588 = vrot.lane.b32.xlu0 %v1745_v10, %s1703_s25 }
 0x2fa   :  { %472 = vadd.xlane.f32.xlu1 %v471_v53 }
 0x30b   :  { %590 = vrot.lane.b32.xlu1 %v1743_v8, %s1703_s25 }
 0x34c   :  { %v265_v55 = vpop.xlane.xlu0 %264 }
 0x34d   :  { %1617 = vrcp.f32 %v265_v55 }
 0x34e   :  { %v262_v56 = vpop.xlane.xlu1 %261 }
 0x34f   :  { %1619 = vrcp.f32 %v262_v56 }
 0x352   :  { %v593_v63 = vpop.permute.xlu1 %592 }
 0x35a   :  { %v1618_v57 = vpop.eup %1617  ;;  %v476_v59 = vpop.xlane.xlu0 %475 }
 0x35b   :  { %v1797_v61 = vmul.f32 %v1618_v57, %v1610_v42  ;;  %1621 = vrcp.f32 %v476_v59 }
 0x35c   :  { %v1620_v58 = vpop.eup %1619 }
 0x35d   :  { %v1795_v60 = vmul.f32 %v1620_v58, %v1612_v45 }
 0x35e   :  { %v595_v62 = vpop.permute.xlu0 %594 }
 0x35f   :  { %1504 = vmatprep.mubr.msk.f32.mxu0 %vm247_vm2, %v1795_v60 }
 0x360   :  { %1505 = vmatmul.mubr.msk.f32.vlgmr.msra.gmra.mxu0 %vm247_vm2, %v1797_v61 }
 0x361   :  { %1515 = vmatpush3.msra.mxu0 %v495_v46 }
 0x362   :  { %1516 = vmatprep.subr.mxu0 %v493_v54  ;;  %v589_v7 = vpop.permute.xlu0 %588 }
 0x363   :  { %1517 = vmatpush3.msra.mxu0 %v493_v54 }
 0x364   :  { %1521 = vmatprep.subr.msk.mxu0 %vm163_vm1, %v595_v62 }
 0x368   :  { %v1622_v1 = vpop.eup %1621 }
 0x369   :  { %v1806_v6 = vmul.f32 %v1622_v1, %v1614_v48 }
 0x383   :  { %v473_v0 = vpop.xlane.xlu1 %472 }
 0x384   :  { %1623 = vrcp.f32 %v473_v0 }
 0x387   :  { %v591_v9 = vpop.permute.xlu1 %590 }
 0x391   :  { %v1624_v3 = vpop.eup %1623 }
 0x392   :  { %v1804_v4 = vmul.f32 %v1624_v3, %v1616_v52 }
 0x394   :  { %1518 = vmatprep.mubr.msk.f32.mxu0 %vm247_vm2, %v1804_v4 }
 0x395   :  { %1519 = vmatmul.mubr.msk.f32.vlgmr.msra.gmra.mxu0 %vm247_vm2, %v1806_v6 }
 0x396   :  { %1522 = vmatpush3.xpose.msk.msra.mxu0 %vm163_vm1, %v595_v62  ;;  %1525 = vmatprep.mubr.msk.f32.mxu0 %vm163_vm1, %v589_v7 }
 0x397   :  { %1523 = vmatprep.subr.msk.mxu0 %vm163_vm1, %v593_v63 }
 0x39a   :  { %1524 = vmatpush3.xpose.msk.msra.mxu0 %vm163_vm1, %v593_v63 }
 0x39d   :  { %1526 = vmatmul.mubr.msk.f32.vlgmr.msra.gmra.mxu0 %vm163_vm1, %v591_v9 }
 0x420   :  { %v1506_v11 = vpop.f32.mrf.mxu0 }
 0x421   :  { %367 = vst.msk [vmem:[#allocation2 + $0x8] sm:$0xff] %vm163_vm1, %v1506_v11 }
 0x422   :  { %v357_v12 = vpop.f32.mrf.mxu0 }
 0x423   :  { %366 = vst.msk [vmem:[#allocation2] sm:$0xff] %vm163_vm1, %v357_v12 }
 0x455   :  { %v1819_v13 = vpop.f32.mrf.mxu0 }
 0x457   :  { %v1821_v14 = vpop.f32.mrf.mxu0 }
 0x45d   :  { %v1527_v15 = vpop.f32.mrf.mxu0 }
 0x45e   :  { %v676_v16 = vadd.f32 %v1527_v15, %v1767_v17 }
 0x45f   :  { %v670_v18 = vpop.f32.mrf.mxu0 }
 0x460   :  { %v671_v20 = vadd.f32 %v670_v18, %v1769_v19  ;;  %v682_v21 = vsel %vm247_vm2, %v676_v16, -inf  ;;  %v46_v18 = vld [vmem:[#allocation5 + $0x28] sm:$0xff] }
 0x461   :  { %683 = vmax.xlane.f32.xlu1 %v682_v21 }
 0x462   :  { %v679_v22 = vsel %vm247_vm2, %v671_v20, -inf }
 0x463   :  { %680 = vmax.xlane.f32.xlu0 %v679_v22 }
 0x472   :  { %714 = vrot.lane.b32.xlu1 %v1743_v8, %s1704_s26 }
 0x476   :  { %814 = vrot.lane.b32.xlu1 %v1743_v8, %s1705_s27 }
 0x47a   :  { %812 = vrot.lane.b32.xlu1 %v1745_v10, %s1705_s27 }
 0x47e   :  { %810 = vrot.lane.b32.xlu1 %v1743_v8, %s1706_s28 }
 0x4ea   :  { %v684_v23 = vpop.xlane.xlu1 %683 }
 0x4eb   :  { %v686_v24 = vsub.f32 %v676_v16, %v684_v23  ;;  %v47_v16 = vld [vmem:[#allocation5 + $0x30] sm:$0xff] }
 0x4ec   :  { %v681_v25 = vpop.xlane.xlu0 %680 }
 0x4ed   :  { %v689_v26 = vmul.f32 1.442695, %v686_v24  ;;  %v685_v27 = vsub.f32 %v671_v20, %v681_v25  ;;  %v45_v20 = vld [vmem:[#allocation5 + $0x20] sm:$0xff] }
 0x4ee   :  { %v715_v28 = vpop.permute.xlu1 %714 }
 0x4ef   :  { %1625 = vpow2.f32 %v689_v26  ;;  %v687_v29 = vmul.f32 1.442695, %v685_v27  ;;  %1528 = vmatprep.subr.mxu1 %v715_v28  ;;  %v1409_v27 = vld [vmem:[#allocation5 + $0xa2] ss:$0 sm:$0xff] }
 0x4f0   :  { %1529 = vmatpush3.msra.mxu1 %v715_v28  ;;  %v1033_v28 = vadd.f32 %v1409_v27, %v1739_v5 }
 0x4f1   :  { %1627 = vpow2.f32 %v687_v29  ;;  %v1032_v29 = vadd.f32 %v1409_v27, %v1735_v2 }
 0x4f2   :  { %v815_v37 = vpop.permute.xlu1 %814 }
 0x4f6   :  { %v813_v43 = vpop.permute.xlu1 %812 }
 0x4fa   :  { %v811_v44 = vpop.permute.xlu1 %810 }
 0x4fc   :  { %v1626_v30 = vpop.eup %1625 }
 0x4fd   :  { %v694_v31 = vsel %vm247_vm2, %v1626_v30, 0.0 }
 0x4fe   :  { %v1628_v32 = vpop.eup %1627  ;;  %695 = vadd.xlane.f32.xlu0 %v694_v31 }
 0x4ff   :  { %v691_v33 = vsel %vm247_vm2, %v1628_v32, 0.0 }
 0x502   :  { %692 = vadd.xlane.f32.xlu0 %v691_v33 }
 0x518   :  { %712 = vrot.lane.b32.xlu0 %v1745_v10, %s1704_s26 }
 0x51c   :  { %808 = vrot.lane.b32.xlu0 %v1745_v10, %s1706_s28 }
 0x587   :  { %v696_v34 = vpop.xlane.xlu0 %695 }
 0x588   :  { %1629 = vrcp.f32 %v696_v34 }
 0x58b   :  { %v693_v35 = vpop.xlane.xlu0 %692 }
 0x58c   :  { %1631 = vrcp.f32 %v693_v35 }
 0x58f   :  { %v713_v36 = vpop.permute.xlu0 %712 }
 0x590   :  { %1530 = vmatprep.subr.mxu1 %v713_v36 }
 0x591   :  { %1531 = vmatpush3.msra.mxu1 %v713_v36 }
 0x592   :  { %1535 = vmatprep.subr.msk.mxu1 %vm163_vm1, %v815_v37 }
 0x593   :  { %v809_v42 = vpop.permute.xlu0 %808 }
 0x595   :  { %v1630_v38 = vpop.eup %1629 }
 0x596   :  { %v1840_v41 = vmul.f32 %v1630_v38, %v1626_v30 }
 0x599   :  { %v1632_v39 = vpop.eup %1631 }
 0x59a   :  { %v1838_v40 = vmul.f32 %v1632_v39, %v1628_v32 }
 0x59c   :  { %1532 = vmatprep.mubr.msk.f32.mxu1 %vm247_vm2, %v1838_v40 }
 0x59d   :  { %1533 = vmatmul.mubr.msk.f32.vlgmr.msra.gmra.mxu1 %vm247_vm2, %v1840_v41 }
 0x59e   :  { %1536 = vmatpush3.xpose.msk.msra.mxu1 %vm163_vm1, %v815_v37  ;;  %1539 = vmatprep.mubr.msk.f32.mxu1 %vm163_vm1, %v809_v42 }
 0x59f   :  { %1537 = vmatprep.subr.msk.mxu1 %vm163_vm1, %v813_v43 }
 0x5a2   :  { %1538 = vmatpush3.xpose.msk.msra.mxu1 %vm163_vm1, %v813_v43 }
 0x5a5   :  { %1540 = vmatmul.mubr.msk.f32.vlgmr.msra.gmra.mxu1 %vm163_vm1, %v811_v44 }
 0x65d   :  { %v1534_v45 = vpop.f32.mrf.mxu1 }
 0x65f   :  { %v788_v46 = vpop.f32.mrf.mxu1 }
 0x665   :  { %v1541_v47 = vpop.f32.mrf.mxu1 }
 0x666   :  { %v896_v48 = vadd.f32 %v1541_v47, %v1767_v17  ;;  %v51_v47 = vld [vmem:[#allocation5 + $0x50] sm:$0xff] }
 0x667   :  { %v890_v49 = vpop.f32.mrf.mxu1 }
 0x668   :  { %v891_v50 = vadd.f32 %v890_v49, %v1769_v19  ;;  %v902_v51 = vsel %vm247_vm2, %v896_v48, -inf  ;;  %v49_v49 = vld [vmem:[#allocation5 + $0x40] sm:$0xff] }
 0x669   :  { %903 = vmax.xlane.f32.xlu1 %v902_v51  ;;  %v59_v51 = vld [vmem:[#allocation5 + $0x90] sm:$0xff] }
 0x66a   :  { %v899_v52 = vsel %vm247_vm2, %v891_v50, -inf }
 0x66b   :  { %900 = vmax.xlane.f32.xlu0 %v899_v52  ;;  %v58_v52 = vld [vmem:[#allocation5 + $0x88] sm:$0xff] }
 0x67a   :  { %934 = vrot.lane.b32.xlu1 %v1743_v8, %s1707_s29 }
 0x67e   :  { %579 = vrot.lane.b32.xlu1 %v1821_v14, %s1695_s13 }
 0x682   :  { %581 = vrot.lane.b32.xlu1 %v1819_v13, %s1695_s13 }
 0x686   :  { %801 = vrot.lane.b32.xlu1 %v1534_v45, %s1708_s30 }
 0x6f2   :  { %v904_v17 = vpop.xlane.xlu1 %903 }
 0x6f3   :  { %v906_v19 = vsub.f32 %v896_v48, %v904_v17  ;;  %v50_v48 = vld [vmem:[#allocation5 + $0x48] sm:$0xff]  ;;  %v57_v17 = vld [vmem:[#allocation5 + $0x80] sm:$0xff] }
 0x6f4   :  { %v901_v53 = vpop.xlane.xlu0 %900 }
 0x6f5   :  { %v909_v54 = vmul.f32 1.442695, %v906_v19  ;;  %v905_v55 = vsub.f32 %v891_v50, %v901_v53  ;;  %v60_v50 = vld [vmem:[#allocation5 + $0x98] sm:$0xff] }
 0x6f6   :  { %v935_v56 = vpop.permute.xlu1 %934 }
 0x6f7   :  { %1633 = vpow2.f32 %v909_v54  ;;  %v907_v57 = vmul.f32 1.442695, %v905_v55  ;;  %1542 = vmatprep.subr.mxu0 %v935_v56 }
 0x6f8   :  { %1543 = vmatpush3.msra.mxu0 %v935_v56 }
 0x6f9   :  { %1635 = vpow2.f32 %v907_v57 }
 0x6fa   :  { %v580_v8 = vpop.permute.xlu1 %579 }
 0x6fb   :  { %586 = vst.msk [vmem:[#allocation2] sm:$0xff] %vm585_vm3, %v580_v8 }
 0x6fe   :  { %v582_v58 = vpop.permute.xlu1 %581 }
 0x6ff   :  { %587 = vst.msk [vmem:[#allocation2 + $0x8] sm:$0xff] %vm585_vm3, %v582_v58  ;;  %v1412_v58 = vld [vmem:[#allocation5 + $0xa3] ss:$0 sm:$0xff] }
 0x702   :  { %v802_v59 = vpop.permute.xlu1 %801 }
 0x703   :  { %807 = vst.msk [vmem:[#allocation2 + $0x8] sm:$0xff] %vm805_vm4, %v802_v59 }
 0x704   :  { %v1634_v62 = vpop.eup %1633 }
 0x705   :  { %v914_v63 = vsel %vm247_vm2, %v1634_v62, 0.0 }
 0x706   :  { %v1636_v0 = vpop.eup %1635  ;;  %915 = vadd.xlane.f32.xlu0 %v914_v63 }
 0x707   :  { %v911_v1 = vsel %vm247_vm2, %v1636_v0, 0.0 }
 0x70a   :  { %912 = vadd.xlane.f32.xlu0 %v911_v1 }
 0x720   :  { %932 = vrot.lane.b32.xlu0 %v1745_v10, %s1707_s29  ;;  %v48_v10 = vld [vmem:[#allocation5 + $0x38] sm:$0xff] }
 0x724   :  { %799 = vrot.lane.b32.xlu0 %v788_v46, %s1708_s30  ;;  %v52_v46 = vld [vmem:[#allocation5 + $0x58] sm:$0xff] }
 0x725   :  { %1560 = vmatprep.subr.mxu1 %v52_v46 }
 0x726   :  { %1561 = vmatpush3.msra.mxu1 %v52_v46 }
 0x727   :  { %1562 = vmatprep.subr.mxu1 %v51_v47 }
 0x728   :  { %1563 = vmatpush3.msra.mxu1 %v51_v47 }
 0x729   :  { %1564 = vmatprep.subr.mxu1 %v50_v48 }
 0x72a   :  { %1565 = vmatpush3.msra.mxu1 %v50_v48 }
 0x72b   :  { %1566 = vmatprep.subr.mxu1 %v49_v49 }
 0x72c   :  { %1567 = vmatpush3.msra.mxu1 %v49_v49 }
 0x78f   :  { %v916_v3 = vpop.xlane.xlu0 %915 }
 0x790   :  { %1637 = vrcp.f32 %v916_v3 }
 0x793   :  { %v913_v7 = vpop.xlane.xlu0 %912 }
 0x794   :  { %1639 = vrcp.f32 %v913_v7 }
 0x797   :  { %v933_v9 = vpop.permute.xlu0 %932 }
 0x798   :  { %1544 = vmatprep.subr.mxu0 %v933_v9 }
 0x799   :  { %1545 = vmatpush3.msra.mxu0 %v933_v9 }
 0x79a   :  { %1549 = vmatprep.subr.mxu0 %v48_v10 }
 0x79b   :  { %v800_v11 = vpop.permute.xlu0 %799 }
 0x79c   :  { %806 = vst.msk [vmem:[#allocation2] sm:$0xff] %vm805_vm4, %v800_v11  ;;  %v56_v11 = vld [vmem:[#allocation5 + $0x78] sm:$0xff] }
 0x79d   :  { %v1638_v12 = vpop.eup %1637 }
 0x79e   :  { %v1869_v15 = vmul.f32 %v1638_v12, %v1634_v62  ;;  %v1413_v62 = vld [vmem:[#allocation5 + $0xa4] ss:$0 sm:$0xff]  ;;  %v55_v12 = vld [vmem:[#allocation5 + $0x70] sm:$0xff] }
 0x7a1   :  { %v1640_v13 = vpop.eup %1639 }
 0x7a2   :  { %v1867_v14 = vmul.f32 %v1640_v13, %v1636_v0  ;;  %v54_v13 = vld [vmem:[#allocation5 + $0x68] sm:$0xff] }
 0x7a4   :  { %1546 = vmatprep.mubr.msk.f32.mxu0 %vm247_vm2, %v1867_v14 }
 0x7a5   :  { %1547 = vmatmul.mubr.msk.f32.vlgmr.msra.gmra.mxu0 %vm247_vm2, %v1869_v15 }
 0x7a6   :  { %1550 = vmatpush3.msra.mxu0 %v48_v10  ;;  %v53_v10 = vld [vmem:[#allocation5 + $0x60] sm:$0xff] }
 0x7a7   :  { %1551 = vmatprep.subr.mxu0 %v47_v16 }
 0x7a8   :  { %1552 = vmatpush3.msra.mxu0 %v47_v16  ;;  %v1414_v16 = vld [vmem:[#allocation5 + $0xa1] ss:$0 sm:$0xff] }
 0x7a9   :  { %1553 = vmatprep.subr.mxu0 %v46_v18 }
 0x7aa   :  { %1554 = vmatpush3.msra.mxu0 %v46_v18 }
 0x7ab   :  { %1555 = vmatprep.subr.mxu0 %v45_v20 }
 0x7ac   :  { %1556 = vmatpush3.msra.mxu0 %v45_v20 }
 0x7ad   :  { %1571 = vmatprep.subr.mxu0 %v60_v50 }
 0x865   :  { %v1548_v21 = vpop.f32.mrf.mxu0 }
 0x866   :  { %1021 = vrot.lane.b32.xlu1 %v1548_v21, %s1709_s3 }
 0x867   :  { %v1008_v22 = vpop.f32.mrf.mxu0 }
 0x868   :  { %1019 = vrot.lane.b32.xlu0 %v1008_v22, %s1709_s3 }
 0x8d8   :  { %v1022_v23 = vpop.permute.xlu1 %1021 }
 0x8d9   :  { %1027 = vst.msk [vmem:[#allocation2 + $0x8] sm:$0xff] %vm1025_vm5, %v1022_v23 }
 0x8da   :  { %v1020_v24 = vpop.permute.xlu0 %1019 }
 0x8db   :  { %1026 = vst.msk [vmem:[#allocation2] sm:$0xff] %vm1025_vm5, %v1020_v24 }
 0x8e0   :  { %v1035_v26 = vld [vmem:[#allocation2 + $0x8] sm:$0xff] }
 0x8e2   :  { %v1034_v25 = vld [vmem:[#allocation2] sm:$0xff] }
 0x8e3   :  { %1557 = vmatprep.mubr.msk.f32.mxu0 %vm75_vm0, %v1034_v25  ;;  %v1417_v25 = vld [vmem:[#allocation5 + $0xa5] ss:$0 sm:$0xff] }
 0x8e4   :  { %1558 = vmatmul.mubr.msk.f32.vlgmr.msra.gmra.mxu0 %vm75_vm0, %v1035_v26 }
 0x8e5   :  { %1572 = vmatpush3.msra.mxu0 %v60_v50 }
 0x8e6   :  { %1573 = vmatprep.subr.mxu0 %v59_v51 }
 0x8e7   :  { %1574 = vmatpush3.msra.mxu0 %v59_v51  ;;  %v1420_v51 = vld [vmem:[#allocation5 + $0xa6] ss:$0 sm:$0xff] }
 0x8e8   :  { %1575 = vmatprep.subr.mxu0 %v58_v52 }
 0x8e9   :  { %1576 = vmatpush3.msra.mxu0 %v58_v52 }
 0x8ea   :  { %1577 = vmatprep.subr.mxu0 %v57_v17 }
 0x8eb   :  { %1578 = vmatpush3.msra.mxu0 %v57_v17 }
 0x8ec   :  { %1579 = vmatprep.subr.mxu0 %v56_v11 }
 0x8ed   :  { %1580 = vmatpush3.msra.mxu0 %v56_v11 }
 0x8ee   :  { %1581 = vmatprep.subr.mxu0 %v55_v12 }
 0x8ef   :  { %1582 = vmatpush3.msra.mxu0 %v55_v12 }
 0x8f0   :  { %1583 = vmatprep.subr.mxu0 %v54_v13 }
 0x8f1   :  { %1584 = vmatpush3.msra.mxu0 %v54_v13 }
 0x8f2   :  { %1585 = vmatprep.subr.mxu0 %v53_v10 }
 0x8f3   :  { %1586 = vmatpush3.msra.mxu0 %v53_v10 }
 0x9a4   :  { %v1559_v30 = vpop.f32.mrf.mxu0 }
 0x9a5   :  { %v1118_v31 = vadd.f32 %v1559_v30, %v1033_v28 }
 0x9a6   :  { %v1108_v32 = vpop.f32.mrf.mxu0 }
 0x9a7   :  { %v1117_v33 = vadd.f32 %v1108_v32, %v1032_v29  ;;  %v1122_v34 = vsel %vm75_vm0, %v1118_v31, 0.0 }
 0x9a8   :  { %1123 = vadd.xlane.f32.xlu1 %v1122_v34 }
 0x9a9   :  { %v1119_v35 = vsel %vm75_vm0, %v1117_v33, 0.0 }
 0x9aa   :  { %1120 = vadd.xlane.f32.xlu0 %v1119_v35 }
 0xa31   :  { %v1124_v36 = vpop.xlane.xlu1 %1123 }
 0xa32   :  { %v1127_v37 = vmul.f32 0.03125, %v1124_v36 }
 0xa33   :  { %v1121_v38 = vpop.xlane.xlu0 %1120 }
 0xa34   :  { %v1126_v39 = vmul.f32 0.03125, %v1121_v38  ;;  %v1129_v42 = vsub.f32 %v1118_v31, %v1127_v37 }
 0xa36   :  { %v1128_v43 = vsub.f32 %v1117_v33, %v1126_v39  ;;  %v1131_v2 = vmul.f32 %v1129_v42, %v1129_v42 }
 0xa38   :  { %v1130_v44 = vmul.f32 %v1128_v43, %v1128_v43  ;;  %v1135_v45 = vsel %vm75_vm0, %v1131_v2, 0.0 }
 0xa3a   :  { %v1132_v5 = vsel %vm75_vm0, %v1130_v44, 0.0 }
 0xa3b   :  { %1133 = vadd.xlane.f32.xlu0 %v1132_v5 }
 0xa3f   :  { %1136 = vadd.xlane.f32.xlu0 %v1135_v45 }
 0xac4   :  { %v1134_v19 = vpop.xlane.xlu0 %1133 }
 0xac5   :  { %v1138_v53 = vmul.f32 0.03125, %v1134_v19  ;;  %v1421_v19 = vld [vmem:[#allocation5 + $0xa7] ss:$0 sm:$0xff] }
 0xac7   :  { %v1140_v54 = vadd.f32 1e-06, %v1138_v53 }
 0xac8   :  { %v1137_v55 = vpop.xlane.xlu0 %1136 }
 0xac9   :  { %1641 = vrsqrt.f32 %v1140_v54  ;;  %v1139_v56 = vmul.f32 0.03125, %v1137_v55 }
 0xacb   :  { %v1141_v57 = vadd.f32 1e-06, %v1139_v56 }
 0xacd   :  { %1643 = vrsqrt.f32 %v1141_v57 }
 0xad6   :  { %v1642_v8 = vpop.eup %1641 }
 0xad7   :  { %v1144_v59 = vmul.f32 %v1642_v8, %v1128_v43  ;;  %v1711_v8 = vmov 0.0  }
 0xad9   :  { %v1150_v63 = vmul.f32 %v1412_v58, %v1144_v59 }
 0xada   :  { %v1644_v0 = vpop.eup %1643 }
 0xadb   :  { %v1145_v1 = vmul.f32 %v1644_v0, %v1129_v42  ;;  %v1156_v3 = vadd.f32 %v1413_v62, %v1150_v63 }
 0xadd   :  { %v1151_v7 = vmul.f32 %v1412_v58, %v1145_v1  ;;  %1568 = vmatprep.mubr.msk.f32.mxu1 %vm75_vm0, %v1156_v3 }
 0xadf   :  { %v1157_v9 = vadd.f32 %v1413_v62, %v1151_v7 }
 0xae1   :  { %1569 = vmatmul.mubr.msk.f32.vlgmr.msra.gmra.mxu1 %vm75_vm0, %v1157_v9 }
 0xba1   :  { %v1570_v18 = vpop.f32.mrf.mxu1 }
 0xba2   :  { %v1240_v20 = vadd.f32 %v1570_v18, %v1414_v16 }
 0xba3   :  { %v1234_v21 = vpop.f32.mrf.mxu1 }
 0xba4   :  { %v1235_v22 = vadd.f32 %v1414_v16, %v1234_v21  ;;  %v1244_v24 = vmax.f32 %v1240_v20, 0.0 }
 0xba6   :  { %v1243_v23 = vmax.f32 %v1235_v22, 0.0 }
 0xba8   :  { %1587 = vmatprep.mubr.msk.f32.mxu0 %vm1249_vm6, %v1243_v23 }
 0xba9   :  { %1588 = vmatmul.mubr.msk.f32.vlgmr.msra.gmra.mxu0 %vm1249_vm6, %v1244_v24 }
 0xc69   :  { %v1589_v26 = vpop.f32.mrf.mxu0 }
 0xc6a   :  { %v1328_v27 = vadd.f32 %v1589_v26, %v1417_v25 }
 0xc6b   :  { %v1322_v28 = vpop.f32.mrf.mxu0 }
 0xc6c   :  { %v1323_v29 = vadd.f32 %v1417_v25, %v1322_v28  ;;  %v1332_v30 = vadd.f32 %v1328_v27, %v1157_v9 }
 0xc6e   :  { %v1336_v31 = vsel %vm75_vm0, %v1332_v30, 0.0  ;;  %v1331_v32 = vadd.f32 %v1323_v29, %v1156_v3 }
 0xc6f   :  { %1337 = vadd.xlane.f32.xlu0 %v1336_v31 }
 0xc70   :  { %v1333_v33 = vsel %vm75_vm0, %v1331_v32, 0.0 }
 0xc71   :  { %1334 = vadd.xlane.f32.xlu1 %v1333_v33 }
 0xc82   :  { %272 = vrot.lane.b32.xlu1 %v1795_v60, %s1710_s4 }
 0xc85   :  { %274 = vrot.lane.b32.xlu0 %v1797_v61, %s1710_s4 }
 0xc86   :  { %483 = vrot.lane.b32.xlu1 %v1804_v4, %s1704_s26 }
 0xc8a   :  { %485 = vrot.lane.b32.xlu1 %v1806_v6, %s1704_s26 }
 0xc8e   :  { %705 = vrot.lane.b32.xlu1 %v1840_v41, %s1700_s22 }
 0xcf8   :  { %v1338_v34 = vpop.xlane.xlu0 %1337 }
 0xcf9   :  { %v1340_v35 = vmul.f32 0.03125, %v1338_v34 }
 0xcfa   :  { %v1335_v36 = vpop.xlane.xlu1 %1334 }
 0xcfb   :  { %v1342_v37 = vsub.f32 %v1332_v30, %v1340_v35  ;;  %v1339_v38 = vmul.f32 0.03125, %v1335_v36 }
 0xcfc   :  { %v275_v39 = vpop.permute.xlu0 %274 }
 0xcfd   :  { %v1341_v42 = vsub.f32 %v1331_v32, %v1339_v38  ;;  %280 = vst.msk [vmem:[%s1943_s2 + $0x8] sm:$0xff] %vm278_vm7, %v275_v39  ;;  %v1344_v60 = vmul.f32 %v1342_v37, %v1342_v37 }
 0xcfe   :  { %v273_v61 = vpop.permute.xlu1 %272 }
 0xcff   :  { %279 = vst.msk [vmem:[%s1943_s2] sm:$0xff] %vm278_vm7, %v273_v61  ;;  %v1348_v4 = vsel %vm75_vm0, %v1344_v60, 0.0  ;;  %v1343_v6 = vmul.f32 %v1341_v42, %v1341_v42 }
 0xd00   :  { %1349 = vadd.xlane.f32.xlu0 %v1348_v4 }
 0xd01   :  { %v1345_v41 = vsel %vm75_vm0, %v1343_v6, 0.0 }
 0xd02   :  { %1346 = vadd.xlane.f32.xlu1 %v1345_v41  ;;  %v484_v43 = vpop.permute.xlu1 %483 }
 0xd03   :  { %490 = vst.msk [vmem:[%s1943_s2] sm:$0xff] %vm489_vm8, %v484_v43 }
 0xd06   :  { %v486_v44 = vpop.permute.xlu1 %485 }
 0xd07   :  { %491 = vst.msk [vmem:[%s1943_s2 + $0x8] sm:$0xff] %vm489_vm8, %v486_v44 }
 0xd0a   :  { %v706_v5 = vpop.permute.xlu1 %705 }
 0xd0b   :  { %711 = vst.msk [vmem:[%s1943_s2 + $0x8] sm:$0xff] %vm709_vm9, %v706_v5 }
 0xd13   :  { %925 = vrot.lane.b32.xlu1 %v1869_v15, %s1702_s24 }
 0xd16   :  { %703 = vrot.lane.b32.xlu0 %v1838_v40, %s1700_s22 }
 0xd1a   :  { %923 = vrot.lane.b32.xlu0 %v1867_v14, %s1702_s24 }
 0xd89   :  { %v1350_v2 = vpop.xlane.xlu0 %1349 }
 0xd8a   :  { %v1352_v45 = vmul.f32 0.03125, %v1350_v2 }
 0xd8b   :  { %v1347_v46 = vpop.xlane.xlu1 %1346 }
 0xd8c   :  { %v1354_v47 = vadd.f32 1e-06, %v1352_v45  ;;  %v1351_v48 = vmul.f32 0.03125, %v1347_v46 }
 0xd8d   :  { %v704_v49 = vpop.permute.xlu0 %703 }
 0xd8e   :  { %1645 = vrsqrt.f32 %v1354_v47  ;;  %v1353_v50 = vadd.f32 1e-06, %v1351_v48  ;;  %710 = vst.msk [vmem:[%s1943_s2] sm:$0xff] %vm709_vm9, %v704_v49 }
 0xd8f   :  { %v926_v15 = vpop.permute.xlu1 %925 }
 0xd90   :  { %1647 = vrsqrt.f32 %v1353_v50  ;;  %931 = vst.msk [vmem:[%s1943_s2 + $0x8] sm:$0xff] %vm929_vm10, %v926_v15 }
 0xd91   :  { %v924_v40 = vpop.permute.xlu0 %923 }
 0xd92   :  { %930 = vst.msk [vmem:[%s1943_s2] sm:$0xff] %vm929_vm10, %v924_v40 }
 0xd9b   :  { %v1646_v14 = vpop.eup %1645 }
 0xd9c   :  { %v1358_v52 = vmul.f32 %v1646_v14, %v1342_v37 }
 0xd9d   :  { %v1648_v17 = vpop.eup %1647 }
 0xd9e   :  { %v1357_v53 = vmul.f32 %v1648_v17, %v1341_v42  ;;  %v1364_v54 = vmul.f32 %v1420_v51, %v1358_v52 }
 0xda0   :  { %v1370_v55 = vadd.f32 %v1421_v19, %v1364_v54  ;;  %v1363_v56 = vmul.f32 %v1420_v51, %v1357_v53 }
 0xda2   :  { %1372 = vst.msk [vmem:[%s1943_s2 + $0x8] sm:$0xff] %vm75_vm0, %v1370_v55  ;;  %v1369_v57 = vadd.f32 %v1421_v19, %v1363_v56 }
 0xda3   :  { %1375 = vst.msk [vmem:[%s1943_s2 + $0x8] sm:$0xff] %vm1373_vm11, %v1711_v8 }
 0xda4   :  { %1371 = vst.msk [vmem:[%s1943_s2] sm:$0xff] %vm75_vm0, %v1369_v57 }
 0xda5   :  { %1374 = vst.msk [vmem:[%s1943_s2] sm:$0xff] %vm1373_vm11, %v1711_v8 }
 0xda6   :  { %1380 = vsyncpa [#allocation4], 1 }
 0xda7   :  { %1381 = vsyncpa [#allocation6], 1 }

</bundles_post_ra>
